<compile_context>
chip_gen: v7x
topology: tpu7x:2x2x1
jax: 0.10.0
libtpu: 0.0.40
codegen_flags: <defaults>
</compile_context>

<pallas_src>
import math

import jax
import jax.numpy as jnp
from jax.experimental import pallas as pl
from jax.experimental.pallas import tpu as pltpu

LANE = 128   # lane-dense padding for every feature axis
SUB = 8      # sublane padding for the batch axis


# ---------------------------------------------------------------------------
# Pallas kernel: full VAE forward for ONE instance (grid iterates instances)
# ---------------------------------------------------------------------------
def _vae_kernel(x_ref, eps_ref,
                we1_ref, be1_ref, we2_ref, be2_ref,
                wd1_ref, bd1_ref, wd2_ref, bd2_ref,
                recon_ref, z_ref, means_ref, logvar_ref):
    x = x_ref[...]                                   # [8, 128] f32 (rows >=2 are pad)
    eps = eps_ref[...]                               # [8, 128] f32

    # ----- encoder MLP: bf16 MXU feed, f32 accumulate, f32 elementwise -----
    h = jnp.dot(x.astype(jnp.bfloat16), we1_ref[...],
                preferred_element_type=jnp.float32) + be1_ref[...]
    h = jnp.maximum(h, 0.0)                          # [8, 128]
    enc = jnp.dot(h.astype(jnp.bfloat16), we2_ref[...],
                  preferred_element_type=jnp.float32) + be2_ref[...]
    enc = jnp.maximum(enc, 0.0)                      # [8, 128]

    # ----- reparameterization: means = enc[0], log_var = enc[1] -----
    means = enc[0:1, :]                              # [1, 128]
    log_var = enc[1:2, :]                            # [1, 128]
    means_ref[...] = means
    logvar_ref[...] = log_var

    std = jnp.exp(0.5 * log_var)                     # [1, 128]
    z = eps * std + means                            # [8, 128] (broadcast over batch)
    z_ref[...] = z

    # ----- decoder MLP -----
    h2 = jnp.dot(z.astype(jnp.bfloat16), wd1_ref[...],
                 preferred_element_type=jnp.float32) + bd1_ref[...]
    h2 = jnp.maximum(h2, 0.0)                        # [8, 128]
    recon = jnp.dot(h2.astype(jnp.bfloat16), wd2_ref[...],
                    preferred_element_type=jnp.float32) + bd2_ref[...]
    recon_ref[...] = jnp.maximum(recon, 0.0)         # [8, 128]


# ---------------------------------------------------------------------------
# Wrappers
# ---------------------------------------------------------------------------
def _pad2(a, rows, cols):
    return jnp.pad(a, ((0, rows - a.shape[0]), (0, cols - a.shape[1])))


def vae_forward_batched(xs, epss, params):
    """Runs N independent VAE forwards in ONE pallas_call (grid over instances).

    xs: [N, B, D_in], epss: [N, B, L]  (B must be 2, as in the original forward)
    Returns (recon [N,B,D_out], z [N,B,L], means [N,L], log_var [N,L]).
    """
    we1, be1, we2, be2, wd1, bd1, wd2, bd2 = params
    N, B, D_in = xs.shape
    H_enc = we1.shape[1]
    L = we2.shape[1]
    D_out = wd2.shape[1]
    assert B == 2, "VAE.forward unpacks encoder output along dim 0 -> batch must be 2"
    assert max(D_in, H_enc, L, wd1.shape[1], D_out) <= LANE and B <= SUB

    # Host-side layout plumbing: lane-pad to 128, sublane-pad batch to 8,
    # pre-cast weights to bf16 (MXU feed), keep biases f32.
    def pad_w(w):
        return _pad2(w, LANE, LANE).astype(jnp.bfloat16)

    def pad_b(b):
        return _pad2(b, 1, LANE).astype(jnp.float32)

    we1p, we2p, wd1p, wd2p = pad_w(we1), pad_w(we2), pad_w(wd1), pad_w(wd2)
    be1p, be2p, bd1p, bd2p = pad_b(be1), pad_b(be2), pad_b(bd1), pad_b(bd2)

    xp = jnp.pad(xs.astype(jnp.float32), ((0, 0), (0, SUB - B), (0, LANE - D_in)))
    ep = jnp.pad(epss.astype(jnp.float32), ((0, 0), (0, SUB - B), (0, LANE - L)))

    inst_spec = pl.BlockSpec((None, SUB, LANE), lambda n: (n, 0, 0))   # per-instance tile
    w_spec = pl.BlockSpec((LANE, LANE), lambda n: (0, 0))              # VMEM-resident
    b_spec = pl.BlockSpec((1, LANE), lambda n: (0, 0))                 # VMEM-resident
    row_spec = pl.BlockSpec((None, 1, LANE), lambda n: (n, 0, 0))      # means / log_var

    recon_p, z_p, means_p, logvar_p = pl.pallas_call(
        _vae_kernel,
        grid=(N,),
        in_specs=[inst_spec, inst_spec,
                  w_spec, b_spec, w_spec, b_spec,
                  w_spec, b_spec, w_spec, b_spec],
        out_specs=(inst_spec, inst_spec, row_spec, row_spec),
        out_shape=(
            jax.ShapeDtypeStruct((N, SUB, LANE), jnp.float32),   # recon (padded)
            jax.ShapeDtypeStruct((N, SUB, LANE), jnp.float32),   # z     (padded)
            jax.ShapeDtypeStruct((N, 1, LANE), jnp.float32),     # means (padded)
            jax.ShapeDtypeStruct((N, 1, LANE), jnp.float32),     # log_var (padded)
        ),
        compiler_params=pltpu.CompilerParams(
            dimension_semantics=("parallel",),   # both TCs on v7x; no-op on v5e/v6e
        ),
    )(xp, ep, we1p, be1p, we2p, be2p, wd1p, bd1p, wd2p, bd2p)

    recon = recon_p[:, :B, :D_out]
    z = z_p[:, :B, :L]
    means = means_p[:, 0, :L]
    log_var = logvar_p[:, 0, :L]
    return recon, z, means, log_var


def vae_forward(x, eps, params):
    """Single-instance forward matching the PyTorch module's signature.

    Returns (recon_x [B,D_out], z [B,L], means [L], log_var [L]).
    """
    if x.ndim > 2:
        x = x.reshape(-1, 28 * 28)   # mirrors x.view(-1, 784) in the PyTorch code
    recon, z, means, log_var = vae_forward_batched(x[None], eps[None], params)
    return recon[0], z[0], means[0], log_var[0]


# ---------------------------------------------------------------------------
# Deterministic parameter init (nn.Linear-style uniform(-1/sqrt(fan_in), ...))
# ---------------------------------------------------------------------------
def init_linear(key, d_in, d_out):
    kw, kb = jax.random.split(key)
    bound = 1.0 / math.sqrt(d_in)
    w = jax.random.uniform(kw, (d_in, d_out), jnp.float32, -bound, bound)
    b = jax.random.uniform(kb, (1, d_out), jnp.float32, -bound, bound)
    return w, b


# ---------------------------------------------------------------------------
# Pure-JAX reference (mxu_dtype=bf16 mirrors the kernel's MXU feeding)
# ---------------------------------------------------------------------------
def vae_reference(x, eps, params, mxu_dtype=jnp.float32):
    we1, be1, we2, be2, wd1, bd1, wd2, bd2 = params

    def mm(a, w):
        return jnp.dot(a.astype(mxu_dtype), w.astype(mxu_dtype),
                       preferred_element_type=jnp.float32)

    h = jnp.maximum(mm(x, we1) + be1, 0.0)
    enc = jnp.maximum(mm(h, we2) + be2, 0.0)
    means, log_var = enc[0], enc[1]
    std = jnp.exp(0.5 * log_var)
    z = eps * std + means
    h2 = jnp.maximum(mm(z, wd1) + bd1, 0.0)
    recon = jnp.maximum(mm(h2, wd2) + bd2, 0.0)
    return recon, z, means, log_var


if __name__ == "__main__":
    # Small shapes: batch MUST be 2 (the original forward unpacks enc along dim 0).
    B = 2
    D_in = 32            # encoder_layer_sizes = [32, 64]
    H_enc = 64
    LATENT = 16          # latent_size
    H_dec = 64           # decoder_layer_sizes = [64, 32]
    D_out = 32
    N = 4                # independent VAE invocations batched into one pallas_call

    key = jax.random.PRNGKey(0)
    k_x, k_eps, k1, k2, k3, k4 = jax.random.split(key, 6)

    xs = jax.random.normal(k_x, (N, B, D_in), jnp.float32)
    epss = jax.random.normal(k_eps, (N, B, LATENT), jnp.float32)  # replaces torch.randn

    we1, be1 = init_linear(k1, D_in, H_enc)
    we2, be2 = init_linear(k2, H_enc, LATENT)
    wd1, bd1 = init_linear(k3, LATENT, H_dec)
    wd2, bd2 = init_linear(k4, H_dec, D_out)
    params = (we1, be1, we2, be2, wd1, bd1, wd2, bd2)

    # ---- batched (grid) invocation ----
    recon, z, means, log_var = jax.block_until_ready(
        vae_forward_batched(xs, epss, params))
    assert recon.shape == (N, B, D_out) and z.shape == (N, B, LATENT)
    assert means.shape == (N, LATENT) and log_var.shape == (N, LATENT)

    for n in range(N):
        # Exact-path check (reference mirrors the bf16 MXU feed).
        r_exp, z_exp, m_exp, lv_exp = vae_reference(
            xs[n], epss[n], params, mxu_dtype=jnp.bfloat16)
        assert jnp.allclose(recon[n], r_exp, atol=1e-3, rtol=1e-3)
        assert jnp.allclose(z[n], z_exp, atol=1e-3, rtol=1e-3)
        assert jnp.allclose(means[n], m_exp, atol=1e-3, rtol=1e-3)
        assert jnp.allclose(log_var[n], lv_exp, atol=1e-3, rtol=1e-3)
        # Loose check vs the original all-f32 semantics (bf16 MXU feeding).
        r_f32, z_f32, m_f32, lv_f32 = vae_reference(
            xs[n], epss[n], params, mxu_dtype=jnp.float32)
        assert jnp.allclose(recon[n], r_f32, atol=1e-1, rtol=1e-1)
        assert jnp.allclose(z[n], z_f32, atol=1e-1, rtol=1e-1)

    # ---- single-instance wrapper (module-shaped outputs) ----
    r1, z1, m1, lv1 = jax.block_until_ready(vae_forward(xs[0], epss[0], params))
    assert r1.shape == (B, D_out) and z1.shape == (B, LATENT)
    assert m1.shape == (LATENT,) and lv1.shape == (LATENT,)
    assert jnp.allclose(r1, recon[0], atol=1e-5)
    assert jnp.allclose(z1, z[0], atol=1e-5)
    assert jnp.allclose(m1, means[0], atol=1e-5)
    assert jnp.allclose(lv1, log_var[0], atol=1e-5)

    print("KERNEL_OK")
</pallas_src>

<mosaic_0001>
module attributes {stable_mosaic.version = 11 : i64} {
  func.func @_vae_kernel(%arg0: i32, %arg1: memref<1x8x128xf32, #tpu.memory_space<vmem>>, %arg2: memref<1x8x128xf32, #tpu.memory_space<vmem>>, %arg3: memref<128x128xbf16, #tpu.memory_space<vmem>>, %arg4: memref<1x128xf32, #tpu.memory_space<vmem>>, %arg5: memref<128x128xbf16, #tpu.memory_space<vmem>>, %arg6: memref<1x128xf32, #tpu.memory_space<vmem>>, %arg7: memref<128x128xbf16, #tpu.memory_space<vmem>>, %arg8: memref<1x128xf32, #tpu.memory_space<vmem>>, %arg9: memref<128x128xbf16, #tpu.memory_space<vmem>>, %arg10: memref<1x128xf32, #tpu.memory_space<vmem>>, %arg11: memref<1x8x128xf32, #tpu.memory_space<vmem>>, %arg12: memref<1x8x128xf32, #tpu.memory_space<vmem>>, %arg13: memref<1x1x128xf32, #tpu.memory_space<vmem>>, %arg14: memref<1x1x128xf32, #tpu.memory_space<vmem>>) attributes {dimension_semantics = [#tpu.dimension_semantics<parallel>], iteration_bounds = array<i64: 4>, scalar_prefetch = 0 : i64, scratch_operands = 0 : i64, tpu.core_type = #tpu.core_type<tc>, window_params = [{transform_indices = @transform_0, window_bounds = array<i64: 1, 8, 128>}, {transform_indices = @transform_1, window_bounds = array<i64: 1, 8, 128>}, {pipeline_mode = #tpu.pipeline_mode<synchronous>, transform_indices = @transform_2, window_bounds = array<i64: 128, 128>}, {pipeline_mode = #tpu.pipeline_mode<synchronous>, transform_indices = @transform_3, window_bounds = array<i64: 1, 128>}, {pipeline_mode = #tpu.pipeline_mode<synchronous>, transform_indices = @transform_4, window_bounds = array<i64: 128, 128>}, {pipeline_mode = #tpu.pipeline_mode<synchronous>, transform_indices = @transform_5, window_bounds = array<i64: 1, 128>}, {pipeline_mode = #tpu.pipeline_mode<synchronous>, transform_indices = @transform_6, window_bounds = array<i64: 128, 128>}, {pipeline_mode = #tpu.pipeline_mode<synchronous>, transform_indices = @transform_7, window_bounds = array<i64: 1, 128>}, {pipeline_mode = #tpu.pipeline_mode<synchronous>, transform_indices = @transform_8, window_bounds = array<i64: 128, 128>}, {pipeline_mode = #tpu.pipeline_mode<synchronous>, transform_indices = @transform_9, window_bounds = array<i64: 1, 128>}, {transform_indices = @transform_10, window_bounds = array<i64: 1, 8, 128>}, {transform_indices = @transform_11, window_bounds = array<i64: 1, 8, 128>}, {transform_indices = @transform_12, window_bounds = array<i64: 1, 1, 128>}, {transform_indices = @transform_13, window_bounds = array<i64: 1, 1, 128>}]} {
    %c0 = arith.constant 0 : index
    %c0_0 = arith.constant 0 : index
    %c0_1 = arith.constant 0 : index
    %0 = vector.load %arg1[%c0, %c0_0, %c0_1] : memref<1x8x128xf32, #tpu.memory_space<vmem>>, vector<1x8x128xf32>
    %1 = vector.shape_cast %0 : vector<1x8x128xf32> to vector<8x128xf32>
    %c0_2 = arith.constant 0 : index
    %c0_3 = arith.constant 0 : index
    %c0_4 = arith.constant 0 : index
    %2 = vector.load %arg2[%c0_2, %c0_3, %c0_4] : memref<1x8x128xf32, #tpu.memory_space<vmem>>, vector<1x8x128xf32>
    %3 = vector.shape_cast %2 : vector<1x8x128xf32> to vector<8x128xf32>
    %4 = arith.truncf %1 : vector<8x128xf32> to vector<8x128xbf16>
    %c0_5 = arith.constant 0 : index
    %c0_6 = arith.constant 0 : index
    %5 = vector.load %arg3[%c0_5, %c0_6] : memref<128x128xbf16, #tpu.memory_space<vmem>>, vector<128x128xbf16>
    %cst = arith.constant dense<0.000000e+00> : vector<8x128xf32>
    %6 = tpu.matmul %4, %5, %cst {dimension_numbers = #tpu.dot_dimension_numbers<[1], [0], [0], [1], [0, 0, 1, 1], [], []>} : vector<8x128xbf16>, vector<128x128xbf16>, vector<8x128xf32> -> vector<8x128xf32>
    %c0_7 = arith.constant 0 : index
    %c0_8 = arith.constant 0 : index
    %7 = vector.load %arg4[%c0_7, %c0_8] : memref<1x128xf32, #tpu.memory_space<vmem>>, vector<1x128xf32>
    %8 = vector.broadcast %7 : vector<1x128xf32> to vector<8x128xf32>
    %9 = arith.addf %6, %8 : vector<8x128xf32>
    %cst_9 = arith.constant 0.000000e+00 : f32
    %10 = vector.broadcast %cst_9 : f32 to vector<8x128xf32>
    %11 = arith.maximumf %9, %10 : vector<8x128xf32>
    %12 = arith.truncf %11 : vector<8x128xf32> to vector<8x128xbf16>
    %c0_10 = arith.constant 0 : index
    %c0_11 = arith.constant 0 : index
    %13 = vector.load %arg5[%c0_10, %c0_11] : memref<128x128xbf16, #tpu.memory_space<vmem>>, vector<128x128xbf16>
    %cst_12 = arith.constant dense<0.000000e+00> : vector<8x128xf32>
    %14 = tpu.matmul %12, %13, %cst_12 {dimension_numbers = #tpu.dot_dimension_numbers<[1], [0], [0], [1], [0, 0, 1, 1], [], []>} : vector<8x128xbf16>, vector<128x128xbf16>, vector<8x128xf32> -> vector<8x128xf32>
    %c0_13 = arith.constant 0 : index
    %c0_14 = arith.constant 0 : index
    %15 = vector.load %arg6[%c0_13, %c0_14] : memref<1x128xf32, #tpu.memory_space<vmem>>, vector<1x128xf32>
    %16 = vector.broadcast %15 : vector<1x128xf32> to vector<8x128xf32>
    %17 = arith.addf %14, %16 : vector<8x128xf32>
    %cst_15 = arith.constant 0.000000e+00 : f32
    %18 = vector.broadcast %cst_15 : f32 to vector<8x128xf32>
    %19 = arith.maximumf %17, %18 : vector<8x128xf32>
    %20 = vector.extract_strided_slice %19 {offsets = [0, 0], sizes = [1, 128], strides = [1, 1]} : vector<8x128xf32> to vector<1x128xf32>
    %21 = vector.extract_strided_slice %19 {offsets = [1, 0], sizes = [1, 128], strides = [1, 1]} : vector<8x128xf32> to vector<1x128xf32>
    %c0_16 = arith.constant 0 : index
    %c0_17 = arith.constant 0 : index
    %c0_18 = arith.constant 0 : index
    %22 = vector.load %arg13[%c0_16, %c0_17, %c0_18] : memref<1x1x128xf32, #tpu.memory_space<vmem>>, vector<1x1x128xf32>
    %23 = vector.shape_cast %22 : vector<1x1x128xf32> to vector<1x128xf32>
    %24 = vector.shape_cast %20 : vector<1x128xf32> to vector<1x1x128xf32>
    tpu.vector_store %arg13[%c0_16, %c0_17, %c0_18], %24 {strides = array<i32>} : memref<1x1x128xf32, #tpu.memory_space<vmem>>, vector<1x1x128xf32>,
    %c0_19 = arith.constant 0 : index
    %c0_20 = arith.constant 0 : index
    %c0_21 = arith.constant 0 : index
    %25 = vector.load %arg14[%c0_19, %c0_20, %c0_21] : memref<1x1x128xf32, #tpu.memory_space<vmem>>, vector<1x1x128xf32>
    %26 = vector.shape_cast %25 : vector<1x1x128xf32> to vector<1x128xf32>
    %27 = vector.shape_cast %21 : vector<1x128xf32> to vector<1x1x128xf32>
    tpu.vector_store %arg14[%c0_19, %c0_20, %c0_21], %27 {strides = array<i32>} : memref<1x1x128xf32, #tpu.memory_space<vmem>>, vector<1x1x128xf32>,
    %cst_22 = arith.constant 5.000000e-01 : f32
    %28 = vector.broadcast %cst_22 : f32 to vector<1x128xf32>
    %29 = arith.mulf %28, %21 : vector<1x128xf32>
    %30 = math.exp %29 : vector<1x128xf32>
    %31 = vector.broadcast %30 : vector<1x128xf32> to vector<8x128xf32>
    %32 = arith.mulf %3, %31 : vector<8x128xf32>
    %33 = vector.broadcast %20 : vector<1x128xf32> to vector<8x128xf32>
    %34 = arith.addf %32, %33 : vector<8x128xf32>
    %c0_23 = arith.constant 0 : index
    %c0_24 = arith.constant 0 : index
    %c0_25 = arith.constant 0 : index
    %35 = vector.load %arg12[%c0_23, %c0_24, %c0_25] : memref<1x8x128xf32, #tpu.memory_space<vmem>>, vector<1x8x128xf32>
    %36 = vector.shape_cast %35 : vector<1x8x128xf32> to vector<8x128xf32>
    %37 = vector.shape_cast %34 : vector<8x128xf32> to vector<1x8x128xf32>
    tpu.vector_store %arg12[%c0_23, %c0_24, %c0_25], %37 {strides = array<i32>} : memref<1x8x128xf32, #tpu.memory_space<vmem>>, vector<1x8x128xf32>,
    %38 = arith.truncf %34 : vector<8x128xf32> to vector<8x128xbf16>
    %c0_26 = arith.constant 0 : index
    %c0_27 = arith.constant 0 : index
    %39 = vector.load %arg7[%c0_26, %c0_27] : memref<128x128xbf16, #tpu.memory_space<vmem>>, vector<128x128xbf16>
    %cst_28 = arith.constant dense<0.000000e+00> : vector<8x128xf32>
    %40 = tpu.matmul %38, %39, %cst_28 {dimension_numbers = #tpu.dot_dimension_numbers<[1], [0], [0], [1], [0, 0, 1, 1], [], []>} : vector<8x128xbf16>, vector<128x128xbf16>, vector<8x128xf32> -> vector<8x128xf32>
    %c0_29 = arith.constant 0 : index
    %c0_30 = arith.constant 0 : index
    %41 = vector.load %arg8[%c0_29, %c0_30] : memref<1x128xf32, #tpu.memory_space<vmem>>, vector<1x128xf32>
    %42 = vector.broadcast %41 : vector<1x128xf32> to vector<8x128xf32>
    %43 = arith.addf %40, %42 : vector<8x128xf32>
    %cst_31 = arith.constant 0.000000e+00 : f32
    %44 = vector.broadcast %cst_31 : f32 to vector<8x128xf32>
    %45 = arith.maximumf %43, %44 : vector<8x128xf32>
    %46 = arith.truncf %45 : vector<8x128xf32> to vector<8x128xbf16>
    %c0_32 = arith.constant 0 : index
    %c0_33 = arith.constant 0 : index
    %47 = vector.load %arg9[%c0_32, %c0_33] : memref<128x128xbf16, #tpu.memory_space<vmem>>, vector<128x128xbf16>
    %cst_34 = arith.constant dense<0.000000e+00> : vector<8x128xf32>
    %48 = tpu.matmul %46, %47, %cst_34 {dimension_numbers = #tpu.dot_dimension_numbers<[1], [0], [0], [1], [0, 0, 1, 1], [], []>} : vector<8x128xbf16>, vector<128x128xbf16>, vector<8x128xf32> -> vector<8x128xf32>
    %c0_35 = arith.constant 0 : index
    %c0_36 = arith.constant 0 : index
    %49 = vector.load %arg10[%c0_35, %c0_36] : memref<1x128xf32, #tpu.memory_space<vmem>>, vector<1x128xf32>
    %50 = vector.broadcast %49 : vector<1x128xf32> to vector<8x128xf32>
    %51 = arith.addf %48, %50 : vector<8x128xf32>
    %cst_37 = arith.constant 0.000000e+00 : f32
    %52 = vector.broadcast %cst_37 : f32 to vector<8x128xf32>
    %53 = arith.maximumf %51, %52 : vector<8x128xf32>
    %c0_38 = arith.constant 0 : index
    %c0_39 = arith.constant 0 : index
    %c0_40 = arith.constant 0 : index
    %54 = vector.load %arg11[%c0_38, %c0_39, %c0_40] : memref<1x8x128xf32, #tpu.memory_space<vmem>>, vector<1x8x128xf32>
    %55 = vector.shape_cast %54 : vector<1x8x128xf32> to vector<8x128xf32>
    %56 = vector.shape_cast %53 : vector<8x128xf32> to vector<1x8x128xf32>
    tpu.vector_store %arg11[%c0_38, %c0_39, %c0_40], %56 {strides = array<i32>} : memref<1x8x128xf32, #tpu.memory_space<vmem>>, vector<1x8x128xf32>,
    return
  }
  func.func @transform_0(%arg0: i32) -> (i32, i32, i32) {
    %c0_i32 = arith.constant 0 : i32
    %c0_i32_0 = arith.constant 0 : i32
    %c0_i32_1 = arith.constant 0 : i32
    return %arg0, %c0_i32, %c0_i32_0 : i32, i32, i32
  }
  func.func @transform_1(%arg0: i32) -> (i32, i32, i32) {
    %c0_i32 = arith.constant 0 : i32
    %c0_i32_0 = arith.constant 0 : i32
    %c0_i32_1 = arith.constant 0 : i32
    return %arg0, %c0_i32, %c0_i32_0 : i32, i32, i32
  }
  func.func @transform_2(%arg0: i32) -> (i32, i32) {
    %c0_i32 = arith.constant 0 : i32
    %c0_i32_0 = arith.constant 0 : i32
    %c0_i32_1 = arith.constant 0 : i32
    return %c0_i32, %c0_i32_0 : i32, i32
  }
  func.func @transform_3(%arg0: i32) -> (i32, i32) {
    %c0_i32 = arith.constant 0 : i32
    %c0_i32_0 = arith.constant 0 : i32
    %c0_i32_1 = arith.constant 0 : i32
    return %c0_i32, %c0_i32_0 : i32, i32
  }
  func.func @transform_4(%arg0: i32) -> (i32, i32) {
    %c0_i32 = arith.constant 0 : i32
    %c0_i32_0 = arith.constant 0 : i32
    %c0_i32_1 = arith.constant 0 : i32
    return %c0_i32, %c0_i32_0 : i32, i32
  }
  func.func @transform_5(%arg0: i32) -> (i32, i32) {
    %c0_i32 = arith.constant 0 : i32
    %c0_i32_0 = arith.constant 0 : i32
    %c0_i32_1 = arith.constant 0 : i32
    return %c0_i32, %c0_i32_0 : i32, i32
  }
  func.func @transform_6(%arg0: i32) -> (i32, i32) {
    %c0_i32 = arith.constant 0 : i32
    %c0_i32_0 = arith.constant 0 : i32
    %c0_i32_1 = arith.constant 0 : i32
    return %c0_i32, %c0_i32_0 : i32, i32
  }
  func.func @transform_7(%arg0: i32) -> (i32, i32) {
    %c0_i32 = arith.constant 0 : i32
    %c0_i32_0 = arith.constant 0 : i32
    %c0_i32_1 = arith.constant 0 : i32
    return %c0_i32, %c0_i32_0 : i32, i32
  }
  func.func @transform_8(%arg0: i32) -> (i32, i32) {
    %c0_i32 = arith.constant 0 : i32
    %c0_i32_0 = arith.constant 0 : i32
    %c0_i32_1 = arith.constant 0 : i32
    return %c0_i32, %c0_i32_0 : i32, i32
  }
  func.func @transform_9(%arg0: i32) -> (i32, i32) {
    %c0_i32 = arith.constant 0 : i32
    %c0_i32_0 = arith.constant 0 : i32
    %c0_i32_1 = arith.constant 0 : i32
    return %c0_i32, %c0_i32_0 : i32, i32
  }
  func.func @transform_10(%arg0: i32) -> (i32, i32, i32) {
    %c0_i32 = arith.constant 0 : i32
    %c0_i32_0 = arith.constant 0 : i32
    %c0_i32_1 = arith.constant 0 : i32
    return %arg0, %c0_i32, %c0_i32_0 : i32, i32, i32
  }
  func.func @transform_11(%arg0: i32) -> (i32, i32, i32) {
    %c0_i32 = arith.constant 0 : i32
    %c0_i32_0 = arith.constant 0 : i32
    %c0_i32_1 = arith.constant 0 : i32
    return %arg0, %c0_i32, %c0_i32_0 : i32, i32, i32
  }
  func.func @transform_12(%arg0: i32) -> (i32, i32, i32) {
    %c0_i32 = arith.constant 0 : i32
    %c0_i32_0 = arith.constant 0 : i32
    %c0_i32_1 = arith.constant 0 : i32
    return %arg0, %c0_i32, %c0_i32_0 : i32, i32, i32
  }
  func.func @transform_13(%arg0: i32) -> (i32, i32, i32) {
    %c0_i32 = arith.constant 0 : i32
    %c0_i32_0 = arith.constant 0 : i32
    %c0_i32_1 = arith.constant 0 : i32
    return %arg0, %c0_i32, %c0_i32_0 : i32, i32, i32
  }
}

</mosaic_0001>

<bundles_post_ra>
// kernel: tpu_custom_call.1
= control target key start
LH: loop header
LB: loop body
LE: loop exit
PB: predicated region body
PF: predicated region fallthrough
CT: control target
= control target key end

     0   :  { %s2578_s0 = inlined_call_operand.hbm [shape: f32[4,8,128], index: 0, kind: input, shape index: {}]   ;;  %s2579_s1 = inlined_call_operand.hbm [shape: f32[4,8,128], index: 1, kind: input, shape index: {}]   ;;  %s2580_s2 = inlined_call_operand.hbm [shape: bf16[128,128], index: 2, kind: input, shape index: {}]   ;;  %s2581_s3 = inlined_call_operand.vmem [shape: f32[1,128], index: 3, kind: input, shape index: {}]   ;;  %s2582_s4 = inlined_call_operand.hbm [shape: bf16[128,128], index: 4, kind: input, shape index: {}]   ;;  %s2583_s5 = inlined_call_operand.vmem [shape: f32[1,128], index: 5, kind: input, shape index: {}]   ;;  %s2584_s6 = inlined_call_operand.hbm [shape: bf16[128,128], index: 6, kind: input, shape index: {}]   ;;  %s2585_s7 = inlined_call_operand.vmem [shape: f32[1,128], index: 7, kind: input, shape index: {}]   ;;  %s2586_s8 = inlined_call_operand.hbm [shape: bf16[128,128], index: 8, kind: input, shape index: {}]   ;;  %s2587_s9 = inlined_call_operand.vmem [shape: f32[1,128], index: 9, kind: input, shape index: {}]   ;;  %s2588_s10 = inlined_call_operand.hbm [shape: f32[4,8,128], index: 10, kind: output, shape index: {0}]   ;;  %s2589_s11 = inlined_call_operand.hbm [shape: f32[4,8,128], index: 11, kind: output, shape index: {1}]   ;;  %s2590_s12 = inlined_call_operand.hbm [shape: f32[4,1,128], index: 12, kind: output, shape index: {2}]   ;;  %s2591_s13 = inlined_call_operand.hbm [shape: f32[4,1,128], index: 13, kind: output, shape index: {3}]  }
   0x1   :  { %2602 = sst [smem:[#allocation28_spill]] %s2578_s0 }
   0x2   :  { %2603 = sst [smem:[#allocation29_spill]] %s2580_s2 }
   0x3   :  { %2604 = sst [smem:[#allocation30_spill]] %s2582_s4 }
   0x4   :  { %2605 = sst [smem:[#allocation31_spill]] %s2584_s6 }
   0x5   :  { %2606 = sst [smem:[#allocation32_spill]] %s2586_s8 }
   0x6   :  { %2607 = sst [smem:[#allocation33_spill]] %s2587_s9 }
   0x7   :  { %2608 = sst [smem:[#allocation34_spill]] %s2588_s10 }
   0x8   :  { %2609 = sst [smem:[#allocation35_spill]] %s2589_s11 }
   0x9   :  { %2610 = sst [smem:[#allocation36_spill]] %s2590_s12 }
   0xa   :  { %2611 = sst [smem:[#allocation37_spill]] %s2591_s13 }
   0xb   :  { %19 = vsyncpa [#allocation3], 0 }
   0xc   :  { %21 = vsyncpa [#allocation3 + $0x1], 0 }
   0xd   :  { %22 = vsyncpa [#allocation6], 0 }
   0xe   :  { %24 = vsyncpa [#allocation6 + $0x1], 0 }
   0xf   :  { %25 = vsyncpa [#allocation9], 0 }
  0x10   :  { %26 = vsyncpa [#allocation12], 0 }
  0x11   :  { %27 = vsyncpa [#allocation4], 0 }
  0x12   :  { %29 = vsyncpa [#allocation4 + $0x1], 0 }
  0x13   :  { %30 = vsyncpa [#allocation15], 0 }
  0x14   :  { %32 = vsyncpa [#allocation15 + $0x1], 0 }
  0x15   :  { %33 = vsyncpa [#allocation18], 0 }
  0x16   :  { %35 = vsyncpa [#allocation18 + $0x1], 0  ;;  %s2088_s25 = smov 0   ;;  %s2090_s26 = smov 0  }
  0x17   :  { %s2092_s27 = smov 0   ;;  %s2094_s28 = smov 0  }
  0x18 LB: > { %s2004_s29 = smov [#allocation7]   ;;  %s2109_s14 = sadd.s32 4294967295, %s2002_s28   ;;  %s2002_s28 = sphi %s2094_s28, %s2648_s28   ;;  %s1998_s27 = sphi %s2092_s27, %s2647_s27   ;;  %s1994_s26 = sphi %s2090_s26, %s2646_s26   ;;  %s1990_s25 = sphi %s2088_s25, %s2645_s25  }
  0x19   : > { %s382_s30 = sshll.u32 %s2004_s29, 4  ;;  %p1332_p0 = scmp.ge.s32.totalorder %s2002_s28, 1  ;;  %s2114_s30 = int_to_ptr.vmem [resolvable:$true] %s382_s30 }
  0x1a   : > { %p2596_p1 = scmp.eq.s32.totalorder %s2109_s14, 0  ;;  %p370_p2 = scmp.lt.s32.totalorder %s2002_s28, 5 }
  0x1b   : > { %s2005_s16 = smov [#allocation8]   ;;  %s2006_s19 = smov [#allocation10]  }
  0x1c   : > { %p2116_p3 = pnand %p1332_p0, %p370_p2  ;;  %s398_s17 = sshll.u32 %s2005_s16, 4  ;;  %s2128_s17 = int_to_ptr.vmem [resolvable:$true] %s398_s17 }
  0x1d   : > { %s414_s20 = sshll.u32 %s2006_s19, 4  ;;  %s2614_s2 = sld [smem:[#allocation29_spill]]  ;;  %s2130_s20 = int_to_ptr.vmem [resolvable:$true] %s414_s20 }
  0x1e   : > { %s2612_s15 = scalar_select %p2116_p3, 1, 0 }
  0x1f   : > { %p1539_p4 = pneg %p2116_p3 }
  0x21   : > { %p2124_p5 = pnand %p1539_p4, %p2596_p1 }
  0x23   : > { %s1656_s23 = scalar_lea.hbm %s2614_s2, 1024  ;;  %p2140_p7 = pneg %p2124_p5 }
  0x24   : > { %p1657_p6 = scmp.ne.s32.totalorder %s2614_s2, %s1656_s23  ;;  %p1663_p10 = scmp.lt.u32.totalorder %s1656_s23, %s2614_s2 }
  0x26   : > { %p1659_p8 = pnand %p2140_p7, %p1657_p6 }
  0x28   : > { %p1660_p9 = pneg %p1659_p8 }
  0x2a   : > { %p1665_p11 = pnand %p1663_p10, %p1660_p9 }
  0x2c   : > { %1668 = shalt.err (!%p1665_p11)
}
  0x2d   : > { %s1669_s21 = scalar_lea.vmem %s2114_s30, 1024  ;;  %p1677_p2 = scmp.lt.s32.totalorder %s2114_s30, %s2114_s30 }
  0x2e   : > { %p1670_p12 = scmp.ne.s32.totalorder %s2114_s30, %s1669_s21  ;;  %p1678_p4 = scmp.lt.s32.totalorder %s1669_s21, %s1669_s21 }
  0x30   : > { %p1672_p13 = pnand %p1670_p12, %p2140_p7  ;;  %p1679_p6 = por %p1678_p4, %p1677_p2 }
  0x32   : > { %p1673_p0 = pneg %p1672_p13 }
  0x34   : > { %p1680_p8 = pnand %p1679_p6, %p1673_p0 }
  0x36   : > { %1683 = shalt.err (!%p1680_p8)
}
  0x37   : > { %s2007_s22 = smov 64   ;;  %s2008_s10 = smov 4  }
  0x38   : > { %1542 = dma.hbm_to_vmem [thread:$0]  (!%p2124_p5), %s2614_s2, 1024, %s2114_s30, [#allocation6], %s2007_s22, %s2007_s22, %s2008_s10  }
  0x39   : > { %s2616_s4 = sld [smem:[#allocation30_spill]] }
  0x3f   : > { %s1684_s21 = scalar_lea.hbm %s2616_s4, 1024 }
  0x40   : > { %p1685_p9 = scmp.ne.s32.totalorder %s2616_s4, %s1684_s21  ;;  %p1691_p12 = scmp.lt.u32.totalorder %s1684_s21, %s2616_s4 }
  0x42   : > { %p1687_p10 = pnand %p1685_p9, %p2140_p7 }
  0x44   : > { %p1688_p11 = pneg %p1687_p10 }
  0x46   : > { %p1693_p13 = pnand %p1691_p12, %p1688_p11 }
  0x48   : > { %1696 = shalt.err (!%p1693_p13)
}
  0x49   : > { %s1697_s30 = scalar_lea.vmem %s2128_s17, 1024  ;;  %p1705_p6 = scmp.lt.s32.totalorder %s2128_s17, %s2128_s17 }
  0x4a   : > { %p1698_p0 = scmp.ne.s32.totalorder %s2128_s17, %s1697_s30  ;;  %p1706_p8 = scmp.lt.s32.totalorder %s1697_s30, %s1697_s30 }
  0x4c   : > { %p1700_p2 = pnand %p1698_p0, %p2140_p7  ;;  %p1707_p9 = por %p1706_p8, %p1705_p6 }
  0x4e   : > { %p1701_p4 = pneg %p1700_p2 }
  0x50   : > { %p1708_p10 = pnand %p1707_p9, %p1701_p4 }
  0x52   : > { %1711 = shalt.err (!%p1708_p10)
}
  0x53   : > { %1545 = dma.hbm_to_vmem [thread:$0]  (!%p2124_p5), %s2616_s4, 1024, %s2128_s17, [#allocation9], %s2007_s22, %s2007_s22, %s2008_s10  }
  0x54   : > { %s2617_s6 = sld [smem:[#allocation31_spill]] }
  0x5a   : > { %s1712_s23 = scalar_lea.hbm %s2617_s6, 1024 }
  0x5b   : > { %p1713_p11 = scmp.ne.s32.totalorder %s2617_s6, %s1712_s23  ;;  %p1719_p0 = scmp.lt.u32.totalorder %s1712_s23, %s2617_s6 }
  0x5d   : > { %p1715_p12 = pnand %p1713_p11, %p2140_p7 }
  0x5f   : > { %p1716_p13 = pneg %p1715_p12 }
  0x61   : > { %p1721_p2 = pnand %p1719_p0, %p1716_p13 }
  0x63   : > { %1724 = shalt.err (!%p1721_p2)
}
  0x64   : > { %s1725_s17 = scalar_lea.vmem %s2130_s20, 1024  ;;  %p1733_p9 = scmp.lt.s32.totalorder %s2130_s20, %s2130_s20 }
  0x65   : > { %p1726_p4 = scmp.ne.s32.totalorder %s2130_s20, %s1725_s17  ;;  %p1734_p10 = scmp.lt.s32.totalorder %s1725_s17, %s1725_s17 }
  0x67   : > { %p1728_p6 = pnand %p1726_p4, %p2140_p7  ;;  %p1735_p11 = por %p1734_p10, %p1733_p9 }
  0x69   : > { %p1729_p8 = pneg %p1728_p6 }
  0x6b   : > { %p1736_p12 = pnand %p1735_p11, %p1729_p8 }
  0x6d   : > { %1739 = shalt.err (!%p1736_p12)
}
  0x6e   : > { %1548 = dma.hbm_to_vmem [thread:$0]  (!%p2124_p5), %s2617_s6, 1024, %s2130_s20, [#allocation9], %s2007_s22, %s2007_s22, %s2008_s10  }
  0x6f   : > { %s2009_s11 = smov [#allocation11]   ;;  %s2618_s8 = sld [smem:[#allocation32_spill]] }
  0x70   : > { %s430_s12 = sshll.u32 %s2009_s11, 4  ;;  %s431_s12 = int_to_ptr.vmem [resolvable:$true] %s430_s12 }
  0x75   : > { %s1740_s24 = scalar_lea.hbm %s2618_s8, 1024 }
  0x76   : > { %p1741_p13 = scmp.ne.s32.totalorder %s2618_s8, %s1740_s24  ;;  %p1747_p4 = scmp.lt.u32.totalorder %s1740_s24, %s2618_s8 }
  0x78   : > { %p1743_p0 = pnand %p1741_p13, %p2140_p7 }
  0x7a   : > { %p1744_p2 = pneg %p1743_p0 }
  0x7c   : > { %p1749_p6 = pnand %p1747_p4, %p1744_p2 }
  0x7e   : > { %1752 = shalt.err (!%p1749_p6)
}
  0x7f   : > { %s1753_s20 = scalar_lea.vmem %s431_s12, 1024  ;;  %p1761_p11 = scmp.lt.s32.totalorder %s431_s12, %s431_s12 }
  0x80   : > { %p1754_p8 = scmp.ne.s32.totalorder %s431_s12, %s1753_s20  ;;  %p1762_p12 = scmp.lt.s32.totalorder %s1753_s20, %s1753_s20 }
  0x82   : > { %p1756_p9 = pnand %p1754_p8, %p2140_p7  ;;  %p1763_p1 = por %p1762_p12, %p1761_p11 }
  0x84   : > { %p1757_p10 = pneg %p1756_p9 }
  0x86   : > { %p1764_p3 = pnand %p1763_p1, %p1757_p10 }
  0x88   : > { %1767 = shalt.err (!%p1764_p3)
}
  0x89   : > { %1551 = dma.hbm_to_vmem [thread:$0]  (!%p2124_p5), %s2618_s8, 1024, %s431_s12, [#allocation12], %s2007_s22, %s2007_s22, %s2008_s10  }
  0x8a   : > { %s2598_s18 = sadd.s32 4294967294, %s2002_s28   ;;  %s2239_s16 = sadd.s32 1, %s2002_s28  }
  0x8b   : > { %s45_s11 = ssub.s32 %s2002_s28, %s2239_s16  ;;  %s48_s13 = sadd.s32 1, %s1998_s27 }
  0x8c   : > { %p46_p1 = scmp.eq.s32.totalorder %s45_s11, 0  ;;  %p55_p3 = scmp.ne.s32.totalorder %s1998_s27, %s1994_s26 }
  0x8d   : > { %p56_p7 = scmp.eq.s32.totalorder %s2002_s28, 0  ;;  %p61_p13 = scmp.ne.s32.totalorder %s1994_s26, %s1990_s25 }
  0x8e   : > { %s2250_s23 = scalar_select %p46_p1, %s1998_s27, %s48_s13  }
  0x8f   : > { %p2252_p0 = por %p56_p7, %p55_p3  ;;  %p2621_p2 = scmp.eq.s32.totalorder %s2109_s14, 0 }
  0x90   : > { %2619 = sst [smem:[#allocation27_spill]] %s2250_s23  ;;  %p279_p4 = scmp.eq.s32.totalorder %s2109_s14, 3 }
  0x91   : > { %p2258_p5 = por %p2621_p2, %p61_p13  ;;  %p285_p6 = scmp.eq.s32.totalorder %s2598_s18, 3 }
  0x92   : > { %p1576_p8 = scmp.lt.s32.totalorder %s2002_s28, 4  ;;  %s447_s10 = sand.u32 1, %s1998_s27  }
  0x93   : > { %s2622_s22 = scalar_select %p2258_p5, 1, 0 }
  0x94   : > { %p2267_p9 = por %p279_p4, %p55_p3  ;;  %p2271_p10 = por %p285_p6, %p61_p13 }
  0x95   : > { %s2275_s19 = sshll.u32 %s447_s10, 3  ;;  %s1339_s21 = sshll.u32 %s2002_s28, 7 }
  0x96   : > { %s2623_s12 = scalar_select %p2267_p9, 1, 0 }
  0x97   : > { %s2624_s29 = scalar_select %p2271_p10, 1, 0 }
  0x98   : > { %s2625_s0 = sld [smem:[#allocation28_spill]]  ;;  %s451_s9 = scalar_lea.vmem [#allocation2], %s2275_s19 }
  0x99   : > { %s458_s11 = sshll.u32 %s451_s9, 4  ;;  %p2288_p11 = pnand %p1576_p8, %p2252_p0  ;;  %s2284_s11 = int_to_ptr.vmem [resolvable:$true] %s458_s11 }
  0x9a   : > { %s2295_s17 = scalar_lea.hbm %s2579_s1, %s1339_s21  ;;  %s465_s20 = sand.u32 1, %s2002_s28  }
  0x9b   : > { %s448_s4 = scalar_lea.sflag [#allocation3], %s447_s10  ;;  %p1770_p1 = pneg %p2288_p11 }
  0x9e   : > { %s2281_s30 = scalar_lea.hbm %s2625_s0, %s1339_s21  ;;  %s1773_s8 = scalar_lea.hbm %s2625_s0, 512 }
  0x9f   : > { %s1768_s6 = scalar_lea.hbm %s2281_s30, 128  ;;  %p1774_p13 = scmp.lt.u32.totalorder %s2281_s30, %s2625_s0 }
  0xa0   : > { %p1769_p12 = scmp.ne.s32.totalorder %s2281_s30, %s1768_s6  ;;  %p1775_p0 = scmp.lt.u32.totalorder %s1773_s8, %s1768_s6 }
  0xa1   : > { %p1777_p4 = scmp.lt.u32.totalorder %s1768_s6, %s2281_s30 }
  0xa2   : > { %p1771_p3 = pnand %p1770_p1, %p1769_p12  ;;  %p1776_p2 = por %p1775_p0, %p1774_p13 }
  0xa4   : > { %p1772_p7 = pneg %p1771_p3  ;;  %p1778_p6 = por %p1777_p4, %p1776_p2 }
  0xa6   : > { %p1779_p8 = pnand %p1778_p6, %p1772_p7 }
  0xa8   : > { %1782 = shalt.err (!%p1779_p8)
}
  0xa9   : > { %s1783_s18 = scalar_lea.vmem %s2284_s11, 128  ;;  %s2010_s10 = smov [#allocation2]  }
  0xaa   : > { %p1784_p12 = scmp.ne.s32.totalorder %s2284_s11, %s1783_s18  ;;  %s1788_s21 = sshll.u32 %s2010_s10, 4  ;;  %s1789_s21 = int_to_ptr.vmem [resolvable:$false] %s1788_s21 }
  0xab   : > { %s1790_s23 = scalar_lea.vmem %s1789_s21, 256  ;;  %p1791_p9 = scmp.lt.s32.totalorder %s2284_s11, %s1789_s21 }
  0xac   : > { %p1786_p3 = pnand %p1784_p12, %p1770_p1  ;;  %p1792_p13 = scmp.lt.s32.totalorder %s1790_s23, %s1783_s18 }
  0xae   : > { %p1787_p10 = pneg %p1786_p3  ;;  %p1793_p0 = por %p1792_p13, %p1791_p9 }
  0xb0   : > { %p1794_p2 = pnand %p1793_p0, %p1787_p10 }
  0xb2   : > { %1797 = shalt.err (!%p1794_p2)
}
  0xb3   : > { %1555 = dma.hbm_to_vmem [thread:$0]  (!%p2288_p11), %s2281_s30, 128, %s2284_s11, %s448_s4  }
  0xb4   : > { %s469_s6 = scalar_lea.vmem [#allocation5], %s2275_s19  ;;  %s466_s24 = scalar_lea.sflag [#allocation6], %s465_s20 }
  0xb5   : > { %s476_s8 = sshll.u32 %s469_s6, 4  ;;  %s1798_s9 = scalar_lea.hbm %s2295_s17, 128  ;;  %s477_s8 = int_to_ptr.vmem [resolvable:$true] %s476_s8 }
  0xb6   : > { %p1799_p9 = scmp.ne.s32.totalorder %s2295_s17, %s1798_s9  ;;  %s1803_s10 = scalar_lea.hbm %s2579_s1, 512 }
  0xb7   : > { %p1804_p4 = scmp.lt.u32.totalorder %s2295_s17, %s2579_s1  ;;  %p1805_p6 = scmp.lt.u32.totalorder %s1803_s10, %s1798_s9 }
  0xb8   : > { %p1801_p10 = pnand %p1799_p9, %p1770_p1  ;;  %p1807_p12 = scmp.lt.u32.totalorder %s1798_s9, %s2295_s17 }
  0xb9   : > { %p1806_p8 = por %p1805_p6, %p1804_p4 }
  0xba   : > { %p1802_p7 = pneg %p1801_p10 }
  0xbb   : > { %p1808_p3 = por %p1807_p12, %p1806_p8 }
  0xbd   : > { %p1809_p13 = pnand %p1808_p3, %p1802_p7 }
  0xbf   : > { %1812 = shalt.err (!%p1809_p13)
}
  0xc0   : > { %s1813_s4 = scalar_lea.vmem %s477_s8, 128  ;;  %s2011_s19 = smov [#allocation5]  }
  0xc1   : > { %p1814_p0 = scmp.ne.s32.totalorder %s477_s8, %s1813_s4  ;;  %s1818_s30 = sshll.u32 %s2011_s19, 4  ;;  %s1819_s30 = int_to_ptr.vmem [resolvable:$false] %s1818_s30 }
  0xc2   : > { %s1820_s11 = scalar_lea.vmem %s1819_s30, 256  ;;  %p1821_p10 = scmp.lt.s32.totalorder %s477_s8, %s1819_s30 }
  0xc3   : > { %p1816_p2 = pnand %p1814_p0, %p1770_p1  ;;  %p1822_p5 = scmp.lt.s32.totalorder %s1820_s11, %s1813_s4 }
  0xc5   : > { %p1817_p9 = pneg %p1816_p2  ;;  %p1823_p4 = por %p1822_p5, %p1821_p10 }
  0xc7   : > { %p1824_p6 = pnand %p1823_p4, %p1817_p9 }
  0xc9   : > { %1827 = shalt.err (!%p1824_p6)
}
  0xca   : > { %1558 = dma.hbm_to_vmem [thread:$0]  (!%p2288_p11), %s2295_s17, 128, %s477_s8, %s466_s24  }
  0xcb   : > { %p2627_p7 = scmp.ne.s32.totalorder %s2612_s15, 0 }
  0xcc   : > { %s2348_s20 = sand.u32 (!%p2627_p7), 1, %s1994_s26   ;;  %p2628_p5 = scmp.ne.s32.totalorder (!%p2627_p7), %s2622_s22, 0 }
  0xcd   : > { %485 = sbr.rel (%p2627_p7) target bundleno = 1165 (0x48d), region = 60  ;;  %s2351_s6 = sshll.u32 (!%p2627_p7), %s2348_s20, 3 }
  0xce   : > { %s488_s9 = scalar_lea.sflag (!%p2627_p7), [#allocation3], %s2348_s20  ;;  %s491_s2 = scalar_lea.vmem (!%p2627_p7), [#allocation2], %s2351_s6 }
  0xd4   : > { %1957 = dma.done.wait (%p2628_p5), %s488_s9, 128  }
  0xd5   : > { %1959 = vsyncadd (%p2628_p5), %s488_s9, 4294967168  ;;  %s496_s15 = sand.u32 1, %s2109_s14   ;;  %s500_s17 = scalar_lea.vmem [#allocation5], %s2351_s6 }
  0xd6   : > { %s497_s13 = scalar_lea.sflag [#allocation6], %s496_s15 }
  0xd7   : > { %1961 = dma.done.wait (%p2628_p5), %s497_s13, 128  }
  0xd8   : > { %1963 = vsyncadd (%p2628_p5), %s497_s13, 4294967168  ;;  %p2629_p11 = scmp.eq.s32.totalorder %s2109_s14, 0 }
  0xda   : > { %1965 = dma.done.wait (%p2629_p11), [#allocation6], 1024   ;;  %p2630_p1 = pmov %p2629_p11 }
  0xdc   : > { %1967 = vsyncadd (%p2630_p1), [#allocation6], 4294966272  ;;  %p2631_p8 = pmov %p2630_p1 }
  0xdd   : > { %p2632_p12 = pmov %p2630_p1 }
  0xde   : > { %1969 = dma.done.wait (%p2631_p8), [#allocation9], 2048  }
  0xdf   : > { %1971 = vsyncadd (%p2632_p12), [#allocation9], 4294965248  ;;  %p2633_p3 = pmov %p2630_p1 }
  0xe0   : > { %p2634_p13 = pmov %p2630_p1 }
  0xe1   : > { %1973 = dma.done.wait (%p2633_p3), [#allocation12], 1024  }
  0xe2   : > { %1975 = vsyncadd (%p2634_p13), [#allocation12], 4294966272  ;;  %v2012_v0 = vmov 0.0   ;;  %vm2013_vm0 = vmmov 0   ;;  %v1622_v1 = vld [vmem:[#allocation7] sm:$0xff]   ;;  %v1623_v2 = vld [vmem:[#allocation7 + $0x8] sm:$0xff]   ;;  %v811_v50 = vlaneseq }
  0xe3   : > { %1431 = vmatprep.subr.bf16.mxu0 %v2012_v0  ;;  %1447 = vmatprep.mubr.msk.bf16.mxu0 %vm2013_vm0, %v2012_v0  ;;  %v1624_v3 = vld [vmem:[#allocation7 + $0x10] sm:$0xff]   ;;  %v1630_v4 = vld [vmem:[#allocation8] sm:$0xff]   ;;  %v1625_v5 = vld [vmem:[#allocation7 + $0x18] sm:$0xff]   ;;  %s570_s10 = scalar_lea.vmem [#allocation16], %s2348_s20  ;;  %s576_s21 = scalar_lea.vmem [#allocation17], %s2348_s20 }
  0xe4   : > { %1451 = vmatprep.subr.bf16.mxu1 %v2012_v0  ;;  %1467 = vmatprep.mubr.msk.bf16.mxu1 %vm2013_vm0, %v2012_v0  ;;  %v1631_v6 = vld [vmem:[#allocation8 + $0x8] sm:$0xff]   ;;  %v1626_v7 = vld [vmem:[#allocation7 + $0x20] sm:$0xff]   ;;  %v1632_v8 = vld [vmem:[#allocation8 + $0x10] sm:$0xff]   ;;  %v812_v51 = vshrl.u32 %v811_v50, 7  ;;  %s564_s23 = scalar_lea.vmem [#allocation14], %s2351_s6  ;;  %s2601_s30 = sshll.u32 %s2109_s14, 7 }
  0xe5   : > { %1432 = vmatpush3.bf16.msra.mxu0 %v1622_v1  ;;  %1452 = vmatpush3.bf16.msra.mxu1 %v1630_v4  ;;  %v1627_v9 = vld [vmem:[#allocation7 + $0x28] sm:$0xff]   ;;  %v1633_v10 = vld [vmem:[#allocation8 + $0x18] sm:$0xff]   ;;  %v1628_v11 = vld [vmem:[#allocation7 + $0x30] sm:$0xff]   ;;  %s1089_s11 = sshll.u32 %s564_s23, 4  ;;  %s2635_s13 = sld [smem:[#allocation35_spill]]  ;;  %s1090_s11 = int_to_ptr.vmem [resolvable:$true] %s1089_s11 }
  0xe6   : > { %1433 = vmatprep.subr.bf16.mxu0 %v2012_v0  ;;  %1453 = vmatprep.subr.bf16.mxu1 %v2012_v0  ;;  %v1634_v12 = vld [vmem:[#allocation8 + $0x20] sm:$0xff]   ;;  %v1629_v13 = vld [vmem:[#allocation7 + $0x38] sm:$0xff]   ;;  %v1635_v15 = vld [vmem:[#allocation8 + $0x28] sm:$0xff]   ;;  %v813_v52 = vsub.s32 1, %v812_v51  ;;  %v818_v53 = vsub.s32 0, %v812_v51  ;;  %s2449_s22 = scalar_lea.sflag [#allocation15], %s496_s15 }
  0xe7   : > { %v578_v14 = vld [vmem:[%s491_s2] sm:$0xff]  ;;  %v1636_v17 = vld [vmem:[#allocation8 + $0x30] sm:$0xff]   ;;  %v1637_v18 = vld [vmem:[#allocation8 + $0x38] sm:$0xff]   ;;  %s1828_s8 = scalar_lea.vmem %s1090_s11, 128  ;;  %p2636_p2 = scmp.ne.s32.totalorder %s2623_s12, 0 }
  0xe8   : > { %v580_v16 = vpack.c.bf16 %v578_v14, %v578_v14  ;;  %v1638_v19 = vld [vmem:[#allocation10] sm:$0xff]   ;;  %v1639_v28 = vld [vmem:[#allocation10 + $0x8] sm:$0xff]   ;;  %v1640_v29 = vld [vmem:[#allocation10 + $0x10] sm:$0xff]   ;;  %p1829_p0 = scmp.ne.s32.totalorder %s1090_s11, %s1828_s8  ;;  %s2014_s24 = smov [#allocation14]  }
  0xe9   : > { %1434 = vmatpush3.bf16.msra.mxu0 %v1623_v2  ;;  %1454 = vmatpush3.bf16.msra.mxu1 %v1631_v6  ;;  %v1351_v20 = vld [vmem:[%s2581_s3] ss:$0 sm:$0xff]  ;;  %v1641_v30 = vld [vmem:[#allocation10 + $0x18] sm:$0xff]   ;;  %v1643_v32 = vld [vmem:[#allocation10 + $0x28] sm:$0xff]   ;;  %s1832_s18 = sshll.u32 %s2014_s24, 4  ;;  %s1833_s18 = int_to_ptr.vmem [resolvable:$false] %s1832_s18 }
  0xea   : > { %1435 = vmatprep.subr.bf16.mxu0 %v2012_v0  ;;  %1455 = vmatprep.subr.bf16.mxu1 %v2012_v0  ;;  %v1642_v31 = vld [vmem:[#allocation10 + $0x20] sm:$0xff]   ;;  %v1644_v33 = vld [vmem:[#allocation10 + $0x30] sm:$0xff]   ;;  %v1645_v34 = vld [vmem:[#allocation10 + $0x38] sm:$0xff]   ;;  %p1830_p9 = pnand %p1829_p0, %p2636_p2  ;;  %s1834_s4 = scalar_lea.vmem %s1833_s18, 256 }
  0xeb   : > { %v1646_v35 = vld [vmem:[#allocation11] sm:$0xff]   ;;  %v1647_v36 = vld [vmem:[#allocation11 + $0x8] sm:$0xff]   ;;  %v1648_v37 = vld [vmem:[#allocation11 + $0x10] sm:$0xff]   ;;  %p1835_p4 = scmp.lt.s32.totalorder %s1090_s11, %s1833_s18  ;;  %p1836_p6 = scmp.lt.s32.totalorder %s1834_s4, %s1828_s8 }
  0xec   : > { %v1649_v38 = vld [vmem:[#allocation11 + $0x18] sm:$0xff]   ;;  %v1650_v39 = vld [vmem:[#allocation11 + $0x20] sm:$0xff]   ;;  %v1651_v40 = vld [vmem:[#allocation11 + $0x28] sm:$0xff]   ;;  %p1831_p10 = pneg %p1830_p9 }
  0xed   : > { %1436 = vmatpush3.bf16.msra.mxu0 %v1624_v3  ;;  %1456 = vmatpush3.bf16.msra.mxu1 %v1632_v8  ;;  %v1360_v41 = vld [vmem:[%s2583_s5] ss:$0 sm:$0xff]  ;;  %v579_v55 = vld [vmem:[%s500_s17] sm:$0xff]  ;;  %s2445_s17 = scalar_lea.hbm %s2635_s13, %s2601_s30  ;;  %p1837_p7 = por %p1836_p6, %p1835_p4 }
  0xee   : > { %1437 = vmatprep.subr.bf16.mxu0 %v2012_v0  ;;  %1457 = vmatprep.subr.bf16.mxu1 %v2012_v0  ;;  %v1652_v61 = vld [vmem:[#allocation11 + $0x30] sm:$0xff]   ;;  %v1653_v62 = vld [vmem:[#allocation11 + $0x38] sm:$0xff]   ;;  %v1369_v63 = vld [vmem:[%s2585_s7] ss:$0 sm:$0xff] }
  0xef   : > { %p1838_p5 = pnand %p1837_p7, %p1831_p10 }
  0xf1   : > { %1438 = vmatpush3.bf16.msra.mxu0 %v1625_v5  ;;  %1458 = vmatpush3.bf16.msra.mxu1 %v1633_v10 }
  0xf2   : > { %1439 = vmatprep.subr.bf16.mxu0 %v2012_v0  ;;  %1459 = vmatprep.subr.bf16.mxu1 %v2012_v0 }
  0xf5   : > { %1440 = vmatpush3.bf16.msra.mxu0 %v1626_v7  ;;  %1460 = vmatpush3.bf16.msra.mxu1 %v1634_v12 }
  0xf6   : > { %1441 = vmatprep.subr.bf16.mxu0 %v2012_v0  ;;  %1461 = vmatprep.subr.bf16.mxu1 %v2012_v0 }
  0xf9   : > { %1442 = vmatpush3.bf16.msra.mxu0 %v1627_v9  ;;  %1462 = vmatpush3.bf16.msra.mxu1 %v1635_v15 }
  0xfa   : > { %1443 = vmatprep.subr.bf16.mxu0 %v2012_v0  ;;  %1463 = vmatprep.subr.bf16.mxu1 %v2012_v0 }
  0xfd   : > { %1444 = vmatpush3.bf16.msra.mxu0 %v1628_v11  ;;  %1464 = vmatpush3.bf16.msra.mxu1 %v1636_v17 }
  0xfe   : > { %1445 = vmatprep.subr.bf16.mxu0 %v2012_v0  ;;  %1465 = vmatprep.subr.bf16.mxu1 %v2012_v0 }
 0x101   : > { %1446 = vmatpush3.bf16.msra.mxu0 %v1629_v13  ;;  %1466 = vmatpush3.bf16.msra.mxu1 %v1637_v18 }
 0x102   : > { %1471 = vmatprep.subr.bf16.mxu0 %v2012_v0  ;;  %1491 = vmatprep.subr.bf16.mxu1 %v2012_v0 }
 0x104   : > { %1448 = vmatmul.mubr.bf16.vlgmr.msra.gmra.mrb[0].mxu0 %v580_v16 }
 0x105   : > { %1487 = vmatprep.mubr.msk.bf16.mxu0 %vm2013_vm0, %v2012_v0  ;;  %1472 = vmatpush3.bf16.msra.mxu0 %v1638_v19 }
 0x106   : > { %1473 = vmatprep.subr.bf16.mxu0 %v2012_v0 }
 0x109   : > { %1474 = vmatpush3.bf16.msra.mxu0 %v1639_v28 }
 0x10a   : > { %1475 = vmatprep.subr.bf16.mxu0 %v2012_v0 }
 0x10d   : > { %1476 = vmatpush3.bf16.msra.mxu0 %v1640_v29 }
 0x10e   : > { %1477 = vmatprep.subr.bf16.mxu0 %v2012_v0 }
 0x111   : > { %1478 = vmatpush3.bf16.msra.mxu0 %v1641_v30 }
 0x112   : > { %1479 = vmatprep.subr.bf16.mxu0 %v2012_v0 }
 0x115   : > { %1480 = vmatpush3.bf16.msra.mxu0 %v1642_v31 }
 0x116   : > { %1481 = vmatprep.subr.bf16.mxu0 %v2012_v0 }
 0x119   : > { %1482 = vmatpush3.bf16.msra.mxu0 %v1643_v32 }
 0x11a   : > { %1483 = vmatprep.subr.bf16.mxu0 %v2012_v0 }
 0x11d   : > { %1484 = vmatpush3.bf16.msra.mxu0 %v1644_v33 }
 0x11e   : > { %1485 = vmatprep.subr.bf16.mxu0 %v2012_v0 }
 0x121   : > { %1486 = vmatpush3.bf16.msra.mxu0 %v1645_v34 }
 0x1d7   : > { %v686_v21 = vpop.f32.mrb[0].mxu0 }
 0x1d8   : > { %v687_v22 = vadd.f32 %v1351_v20, %v686_v21  ;;  %v1449_v23 = vpop.f32.mrb[1].mxu0 }
 0x1d9   : > { %v689_v24 = vpop.f32.mrb[2].mxu0 }
 0x1da   : > { %v692_v25 = vmax.f32 %v687_v22, 0.0  ;;  %v1450_v26 = vpop.f32.mrb[3].mxu0 }
 0x1dc   : > { %v693_v27 = vpack.c.bf16 %v692_v25, %v692_v25 }
 0x1de   : > { %1468 = vmatmul.mubr.bf16.vlgmr.msra.gmra.mrb[0].mxu1 %v693_v27 }
 0x1df   : > { %1507 = vmatprep.mubr.msk.bf16.mxu1 %vm2013_vm0, %v2012_v0  ;;  %1492 = vmatpush3.bf16.msra.mxu1 %v1646_v35 }
 0x1e0   : > { %1493 = vmatprep.subr.bf16.mxu1 %v2012_v0 }
 0x1e3   : > { %1494 = vmatpush3.bf16.msra.mxu1 %v1647_v36 }
 0x1e4   : > { %1495 = vmatprep.subr.bf16.mxu1 %v2012_v0 }
 0x1e7   : > { %1496 = vmatpush3.bf16.msra.mxu1 %v1648_v37 }
 0x1e8   : > { %1497 = vmatprep.subr.bf16.mxu1 %v2012_v0 }
 0x1eb   : > { %1498 = vmatpush3.bf16.msra.mxu1 %v1649_v38 }
 0x1ec   : > { %1499 = vmatprep.subr.bf16.mxu1 %v2012_v0 }
 0x1ef   : > { %1500 = vmatpush3.bf16.msra.mxu1 %v1650_v39 }
 0x1f0   : > { %1501 = vmatprep.subr.bf16.mxu1 %v2012_v0 }
 0x1f3   : > { %1502 = vmatpush3.bf16.msra.mxu1 %v1651_v40 }
 0x1f4   : > { %1503 = vmatprep.subr.bf16.mxu1 %v2012_v0 }
 0x1f7   : > { %1504 = vmatpush3.bf16.msra.mxu1 %v1652_v61 }
 0x1f8   : > { %1505 = vmatprep.subr.bf16.mxu1 %v2012_v0 }
 0x1fb   : > { %1506 = vmatpush3.bf16.msra.mxu1 %v1653_v62 }
 0x2b1   : > { %v799_v42 = vpop.f32.mrb[0].mxu1 }
 0x2b2   : > { %v800_v43 = vadd.f32 %v1360_v41, %v799_v42  ;;  %v1469_v44 = vpop.f32.mrb[1].mxu1 }
 0x2b3   : > { %v802_v45 = vpop.f32.mrb[2].mxu1 }
 0x2b4   : > { %v805_v46 = vmax.f32 %v800_v43, 0.0  ;;  %v1470_v47 = vpop.f32.mrb[3].mxu1 }
 0x2b6   : > { %v808_v48 = vmul.f32 0.5, %v805_v46  ;;  %806 = vst [vmem:[%s570_s10] sm:$0x1] %v805_v46  ;;  %807 = vst [vmem:[%s576_s21 - $0x1] sm:$0x2] %v805_v46  ;;  %v819_v57 = vrot.slane %v805_v46, %v818_v53 }
 0x2b8   : > { %v809_v49 = vmul.f32 1.442695, %v808_v48 }
 0x2ba   : > { %1654 = vpow2.f32 %v809_v49 }
 0x2c4   : > { %v1655_v54 = vpop.eup %1654 }
 0x2c5   : > { %v814_v56 = vrot.slane %v1655_v54, %v813_v52 }
 0x2c7   : > { %v815_v58 = vmul.f32 %v814_v56, %v579_v55 }
 0x2c9   : > { %v820_v59 = vadd.f32 %v819_v57, %v815_v58 }
 0x2cb   : > { %v822_v60 = vpack.c.bf16 %v820_v59, %v820_v59  ;;  %821 = vst [vmem:[%s564_s23] sm:$0xff] %v820_v59 }
 0x2cd   : > { %1488 = vmatmul.mubr.bf16.vlgmr.msra.gmra.mrb[4].mxu0 %v822_v60 }
 0x3a0   : > { %v928_v1 = vpop.f32.mrb[4].mxu0 }
 0x3a1   : > { %v929_v2 = vadd.f32 %v1369_v63, %v928_v1  ;;  %v1489_v3 = vpop.f32.mrb[5].mxu0 }
 0x3a2   : > { %v931_v4 = vpop.f32.mrb[6].mxu0 }
 0x3a3   : > { %v934_v5 = vmax.f32 %v929_v2, 0.0  ;;  %v1490_v6 = vpop.f32.mrb[7].mxu0 }
 0x3a5   : > { %v935_v7 = vpack.c.bf16 %v934_v5, %v934_v5 }
 0x3a7   : > { %1508 = vmatmul.mubr.bf16.vlgmr.msra.gmra.mrb[4].mxu1 %v935_v7 }
 0x3a8   : > { %1841 = shalt.err (!%p1838_p5)
}
 0x3a9   : > { %s1842_s15 = scalar_lea.hbm %s2445_s17, 128  ;;  %s1846_s9 = scalar_lea.hbm %s2635_s13, 512 }
 0x3aa   : > { %p1843_p11 = scmp.ne.s32.totalorder %s2445_s17, %s1842_s15  ;;  %p1847_p12 = scmp.lt.u32.totalorder %s2445_s17, %s2635_s13 }
 0x3ab   : > { %p1848_p3 = scmp.lt.u32.totalorder %s1846_s9, %s1842_s15  ;;  %p1850_p0 = scmp.lt.u32.totalorder %s1842_s15, %s2445_s17 }
 0x3ac   : > { %p1844_p1 = pnand %p1843_p11, %p2636_p2 }
 0x3ad   : > { %p1849_p13 = por %p1848_p3, %p1847_p12 }
 0x3ae   : > { %p1845_p8 = pneg %p1844_p1 }
 0x3af   : > { %p1851_p9 = por %p1850_p0, %p1849_p13 }
 0x3b1   : > { %p1852_p10 = pnand %p1851_p9, %p1845_p8 }
 0x3b3   : > { %1855 = shalt.err (!%p1852_p10)
}
 0x3b4   : > { %1532 = dma.vmem_to_hbm [thread:$0]  (%p2636_p2), %s1090_s11, 128, %s2445_s17, %s2449_s22  }
 0x3b5   : > { %s1391_s8 = sshll.u32 %s2109_s14, 4  ;;  %s2637_s23 = sld [smem:[#allocation36_spill]] }
 0x3b6   : > { %s1102_s15 = sshll.u32 %s570_s10, 4  ;;  %s2015_s2 = smov [#allocation16]   ;;  %s1103_s15 = int_to_ptr.vmem [resolvable:$true] %s1102_s15 }
 0x3b7   : > { %s1856_s9 = scalar_lea.vmem %s1103_s15, 16  ;;  %s1860_s24 = sshll.u32 %s2015_s2, 4  ;;  %s1861_s24 = int_to_ptr.vmem [resolvable:$false] %s1860_s24 }
 0x3b8   : > { %p1857_p4 = scmp.ne.s32.totalorder %s1103_s15, %s1856_s9  ;;  %s1862_s30 = scalar_lea.vmem %s1861_s24, 32 }
 0x3b9   : > { %p1863_p5 = scmp.lt.s32.totalorder %s1103_s15, %s1861_s24  ;;  %p1864_p11 = scmp.lt.s32.totalorder %s1862_s30, %s1856_s9 }
 0x3ba   : > { %p1858_p6 = pnand %p1857_p4, %p2636_p2 }
 0x3bb   : > { %s2475_s19 = scalar_lea.hbm %s2637_s23, %s1391_s8  ;;  %p1865_p1 = por %p1864_p11, %p1863_p5 }
 0x3bc   : > { %p1859_p7 = pneg %p1858_p6 }
 0x3be   : > { %p1866_p8 = pnand %p1865_p1, %p1859_p7 }
 0x3c0   : > { %1869 = shalt.err (!%p1866_p8)
}
 0x3c1   : > { %s1870_s10 = scalar_lea.hbm %s2475_s19, 16  ;;  %s1874_s18 = scalar_lea.hbm %s2637_s23, 64 }
 0x3c2   : > { %p1871_p12 = scmp.ne.s32.totalorder %s2475_s19, %s1870_s10  ;;  %p1875_p0 = scmp.lt.u32.totalorder %s2475_s19, %s2637_s23 }
 0x3c3   : > { %p1876_p9 = scmp.lt.u32.totalorder %s1874_s18, %s1870_s10  ;;  %p1878_p4 = scmp.lt.u32.totalorder %s1870_s10, %s2475_s19 }
 0x3c4   : > { %p1872_p3 = pnand %p1871_p12, %p2636_p2 }
 0x3c5   : > { %p1877_p10 = por %p1876_p9, %p1875_p0 }
 0x3c6   : > { %p1873_p13 = pneg %p1872_p3 }
 0x3c7   : > { %p1879_p6 = por %p1878_p4, %p1877_p10 }
 0x3c9   : > { %p1880_p7 = pnand %p1879_p6, %p1873_p13 }
 0x3cb   : > { %1883 = shalt.err (!%p1880_p7)
}
 0x3cc   : > { %1533 = dma.vmem_to_hbm [thread:$0]  (%p2636_p2), %s1103_s15, 16, %s2475_s19, %s2449_s22  }
 0x3cd   : > { %s2638_s24 = sld [smem:[#allocation37_spill]]  ;;  %s1115_s10 = sshll.u32 %s576_s21, 4  ;;  %s1116_s10 = int_to_ptr.vmem [resolvable:$true] %s1115_s10 }
 0x3ce   : > { %s1064_s17 = scalar_lea.sflag [#allocation18], %s2348_s20  ;;  %s1884_s18 = scalar_lea.vmem %s1116_s10, 16 }
 0x3cf   : > { %p1885_p5 = scmp.ne.s32.totalorder %s1116_s10, %s1884_s18  ;;  %s2016_s4 = smov [#allocation17]  }
 0x3d0   : > { %s1888_s2 = sshll.u32 %s2016_s4, 4  ;;  %s1889_s2 = int_to_ptr.vmem [resolvable:$false] %s1888_s2 }
 0x3d1   : > { %p1886_p11 = pnand %p1885_p5, %p2636_p2  ;;  %s1890_s0 = scalar_lea.vmem %s1889_s2, 32 }
 0x3d2   : > { %p1891_p8 = scmp.lt.s32.totalorder %s1116_s10, %s1889_s2  ;;  %p1892_p12 = scmp.lt.s32.totalorder %s1890_s0, %s1884_s18 }
 0x3d3   : > { %s2502_s11 = scalar_lea.hbm %s2638_s24, %s1391_s8  ;;  %p1887_p1 = pneg %p1886_p11 }
 0x3d4   : > { %p1893_p3 = por %p1892_p12, %p1891_p8 }
 0x3d6   : > { %p1894_p13 = pnand %p1893_p3, %p1887_p1 }
 0x3d8   : > { %1897 = shalt.err (!%p1894_p13)
}
 0x3d9   : > { %s1898_s21 = scalar_lea.hbm %s2502_s11, 16  ;;  %s1902_s19 = scalar_lea.hbm %s2638_s24, 64 }
 0x3da   : > { %p1899_p0 = scmp.ne.s32.totalorder %s2502_s11, %s1898_s21  ;;  %p1903_p4 = scmp.lt.u32.totalorder %s2502_s11, %s2638_s24 }
 0x3db   : > { %p1904_p6 = scmp.lt.u32.totalorder %s1902_s19, %s1898_s21  ;;  %p1906_p5 = scmp.lt.u32.totalorder %s1898_s21, %s2502_s11 }
 0x3dc   : > { %p1900_p9 = pnand %p1899_p0, %p2636_p2 }
 0x3dd   : > { %p1905_p7 = por %p1904_p6, %p1903_p4 }
 0x3de   : > { %p1901_p10 = pneg %p1900_p9 }
 0x3df   : > { %p1907_p11 = por %p1906_p5, %p1905_p7 }
 0x3e1   : > { %p1908_p1 = pnand %p1907_p11, %p1901_p10 }
 0x3e3   : > { %1911 = shalt.err (!%p1908_p1)
}
 0x3e4   : > { %1534 = dma.vmem_to_hbm [thread:$0]  (%p2636_p2), %s1116_s10, 16, %s2502_s11, %s1064_s17  }
 0x3e5   : > { %s2639_s18 = sld [smem:[#allocation33_spill]]  ;;  %s557_s4 = scalar_lea.vmem [#allocation13], %s2351_s6 }
 0x3e6   : > { %s1076_s2 = sshll.u32 %s557_s4, 4  ;;  %s2640_s21 = sshll.u32 %s2109_s14, 7  ;;  %s2535_s2 = int_to_ptr.vmem [resolvable:$true] %s1076_s2 }
 0x3e7   : > { %s2641_s19 = sld [smem:[#allocation34_spill]]  ;;  %s1050_s11 = scalar_lea.sflag [#allocation4], %s2348_s20 }
 0x3e8   : > { %s1912_s6 = scalar_lea.vmem %s2535_s2, 128  ;;  %s2017_s10 = smov [#allocation13]  }
 0x3e9   : > { %p1913_p8 = scmp.ne.s32.totalorder %s2535_s2, %s1912_s6  ;;  %s1916_s17 = sshll.u32 %s2017_s10, 4  ;;  %s1917_s17 = int_to_ptr.vmem [resolvable:$false] %s1916_s17 }
 0x3ea   : > { %s1918_s14 = scalar_lea.vmem %s1917_s17, 256  ;;  %p1919_p13 = scmp.lt.s32.totalorder %s2535_s2, %s1917_s17 }
 0x3eb   : > { %v1378_v0 = vld [vmem:[%s2639_s18] ss:$0 sm:$0xff]  ;;  %p1914_p12 = pnand %p1913_p8, %p2636_p2  ;;  %p1920_p0 = scmp.lt.s32.totalorder %s1918_s14, %s1912_s6 }
 0x3ed   : > { %s2533_s15 = scalar_lea.hbm %s2641_s19, %s2640_s21  ;;  %p1915_p3 = pneg %p1914_p12 }
 0x3ee   : > { %p1921_p9 = por %p1920_p0, %p1919_p13 }
 0x3f0   : > { %p1922_p10 = pnand %p1921_p9, %p1915_p3 }
 0x47a   : > { %v1041_v8 = vpop.f32.mrb[4].mxu1 }
 0x47b   : > { %v1042_v9 = vadd.f32 %v1378_v0, %v1041_v8  ;;  %v1509_v10 = vpop.f32.mrb[5].mxu1 }
 0x47c   : > { %v1044_v11 = vpop.f32.mrb[6].mxu1 }
 0x47d   : > { %v1047_v12 = vmax.f32 %v1042_v9, 0.0  ;;  %v1510_v13 = vpop.f32.mrb[7].mxu1 }
 0x47f   : > { %1048 = vst [vmem:[%s557_s4] sm:$0xff] %v1047_v12 }
 0x480   : > { %1925 = shalt.err (!%p1922_p10)
}
 0x481   : > { %s1926_s20 = scalar_lea.hbm %s2533_s15, 128  ;;  %s1930_s9 = scalar_lea.hbm %s2641_s19, 512 }
 0x482   : > { %p1927_p4 = scmp.ne.s32.totalorder %s2533_s15, %s1926_s20  ;;  %p1931_p5 = scmp.lt.u32.totalorder %s2533_s15, %s2641_s19 }
 0x483   : > { %p1932_p11 = scmp.lt.u32.totalorder %s1930_s9, %s1926_s20  ;;  %p1934_p8 = scmp.lt.u32.totalorder %s1926_s20, %s2533_s15 }
 0x484   : > { %p1928_p6 = pnand %p1927_p4, %p2636_p2 }
 0x485   : > { %p1933_p1 = por %p1932_p11, %p1931_p5 }
 0x486   : > { %p1929_p7 = pneg %p1928_p6 }
 0x487   : > { %p1935_p12 = por %p1934_p8, %p1933_p1 }
 0x489   : > { %p1936_p3 = pnand %p1935_p12, %p1929_p7 }
 0x48b   : > { %1939 = shalt.err (!%p1936_p3)
}
 0x48c   : > { %1531 = dma.vmem_to_hbm [thread:$0]  (%p2636_p2), %s2535_s2, 128, %s2533_s15, %s1050_s11  }
 0x48d PF: > { %p1581_p13 = scmp.ge.s32.totalorder %s2002_s28, 2  ;;  %s1127_s21 = sand.u32 1, %s1990_s25  }
 0x48e   : > { %p2642_p0 = scmp.ne.s32.totalorder %s2624_s29, 0  ;;  %s1128_s22 = scalar_lea.sflag [#allocation4], %s1127_s21 }
 0x490   : > { %p1560_p9 = pnand %p1581_p13, %p2642_p0 }
 0x492   : > { %1977 = dma.done.wait (!%p1560_p9), %s1128_s22, 128  }
 0x493   : > { %1979 = vsyncadd (!%p1560_p9), %s1128_s22, 4294967168  ;;  %s2643_s8 = sadd.s32 4294967294, %s2002_s28  }
 0x494   : > { %s1136_s6 = sand.u32 1, %s2643_s8  }
 0x495   : > { %s1137_s10 = scalar_lea.sflag [#allocation15], %s1136_s6 }
 0x496   : > { %1981 = dma.done.wait (!%p1560_p9), %s1137_s10, 144  }
 0x497   : > { %1983 = vsyncadd (!%p1560_p9), %s1137_s10, 4294967152  ;;  %s1154_s12 = scalar_lea.sflag [#allocation18], %s1127_s21 }
 0x498   : > { %1985 = dma.done.wait (!%p1560_p9), %s1154_s12, 16  }
 0x499   : > { %1987 = vsyncadd (!%p1560_p9), %s1154_s12, 4294967280  ;;  %s2644_s2 = sld [smem:[#allocation27_spill]]  ;;  %p38_p2 = scmp.ge.s32.totalorder %s2239_s16, 6  }
 0x49a   : > { %s2645_s25 = smov %s1994_s26  ;;  %s2646_s26 = smov %s1998_s27 }
 0x49b   : > { %s2648_s28 = smov %s2239_s16  ;;  %40 = sbr.rel (!%p38_p2) target bundleno = 24 (0x18), region = 183 }
 0x49f   : > { %s2647_s27 = smov %s2644_s2 }
 0x4a2   :  { %1158 = vsyncpa [#allocation3], 1 }
 0x4a3   :  { %1160 = vsyncpa [#allocation3 + $0x1], 1 }
 0x4a4   :  { %1161 = vsyncpa [#allocation6], 1 }
 0x4a5   :  { %1163 = vsyncpa [#allocation6 + $0x1], 1 }
 0x4a6   :  { %1164 = vsyncpa [#allocation9], 1 }
 0x4a7   :  { %1165 = vsyncpa [#allocation12], 1 }
 0x4a8   :  { %1166 = vsyncpa [#allocation4], 1 }
 0x4a9   :  { %1168 = vsyncpa [#allocation4 + $0x1], 1 }
 0x4aa   :  { %1169 = vsyncpa [#allocation15], 1 }
 0x4ab   :  { %1171 = vsyncpa [#allocation15 + $0x1], 1 }
 0x4ac   :  { %1172 = vsyncpa [#allocation18], 1 }
 0x4ad   :  { %1174 = vsyncpa [#allocation18 + $0x1], 1 }

</bundles_post_ra>
